<compile_context>
chip_gen: v5e
topology: v5e:2x2
jax: 0.10.0
libtpu: 0.0.40
codegen_flags: <defaults>
</compile_context>

<pallas_src>
import functools
import math

import jax
import jax.numpy as jnp
from jax.experimental import pallas as pl
from jax.experimental.pallas import tpu as pltpu


_NEG_INF = -1e30   # finite mask value: avoids NaN propagation for fully-masked rows


def _tpu_generation():
    """Best-effort TPU generation from device_kind ('TPU v5 lite' -> 5, 'TPU7x' -> 7)."""
    try:
        kind = jax.devices()[0].device_kind.lower()
    except Exception:
        return 0
    for gen in (7, 6, 5, 4, 3, 2):
        if str(gen) in kind:
            return gen
    return 0


_GEN = _tpu_generation()
# v5e/v6e have 128 MiB physical VMEM; v7x only 64 MiB -> smaller scoped budget.
if _GEN >= 7:
    _VMEM_LIMIT = 48 * 1024 * 1024
elif _GEN >= 5:
    _VMEM_LIMIT = 96 * 1024 * 1024
else:
    _VMEM_LIMIT = 32 * 1024 * 1024
# bf16 exp on v6e/v7x (bf16 EUP ~2x f32); f32 elsewhere (v5e has no bf16 EUP/VPU).
_EXP_DTYPE = jnp.bfloat16 if _GEN >= 6 else jnp.float32


def _pick_tile(n, cap, align):
    """Largest multiple of `align` that is <= cap and divides n; else the full extent."""
    if n <= cap:
        return n
    t = (cap // align) * align
    while t >= align:
        if n % t == 0:
            return t
        t -= align
    return n  # fallback: full extent (always a legal block)


# ---------------------------------------------------------------------------
# Tiled linear projection: y = (x @ w + b) * scale   (w stored as [d_in, d_out])
# ---------------------------------------------------------------------------

def _linear_kernel(x_ref, w_ref, b_ref, o_ref, *, scale):
    # Cast to bf16 in-kernel (VPU, hidden under the matmul) instead of in the wrapper.
    acc = jnp.dot(x_ref[...].astype(jnp.bfloat16), w_ref[...].astype(jnp.bfloat16),
                  preferred_element_type=jnp.float32)
    acc = acc + b_ref[...]
    if scale != 1.0:            # trace-time constant: folds 1/sqrt(d_k) into the Q proj
        acc = acc * scale
    o_ref[...] = acc.astype(o_ref.dtype)


def linear(x, w, b, *, scale=1.0, out_dtype=jnp.float32, block_n=512, block_out=256):
    """x: [N, d_in], w: [d_in, d_out] (pre-transposed), b: [d_out] -> [N, d_out]."""
    n, d_in = x.shape
    d_out = w.shape[1]
    tn = _pick_tile(n, block_n, 32)
    to = _pick_tile(d_out, block_out, 128)
    grid = (n // tn, d_out // to)
    # TODO(synk): add an 'arbitrary' K grid axis + f32 accumulator scratch for very large d_in.
    return pl.pallas_call(
        functools.partial(_linear_kernel, scale=scale),
        out_shape=jax.ShapeDtypeStruct((n, d_out), out_dtype),
        grid=grid,
        in_specs=[
            pl.BlockSpec((tn, d_in), lambda i, j: (i, 0)),
            pl.BlockSpec((d_in, to), lambda i, j: (0, j)),
            pl.BlockSpec((1, to), lambda i, j: (0, j)),
        ],
        out_specs=pl.BlockSpec((tn, to), lambda i, j: (i, j)),
        compiler_params=pltpu.CompilerParams(
            dimension_semantics=("parallel", "parallel"),
            vmem_limit_bytes=_VMEM_LIMIT,
        ),
    )(x, w, b.reshape(1, d_out).astype(jnp.float32))


# ---------------------------------------------------------------------------
# Flash attention core (online softmax over KV tiles, one head per grid point)
# ---------------------------------------------------------------------------

def _flash_attn_kernel(q_ref, kt_ref, v_ref, mask_ref, o_ref, m_sc, l_sc, acc_sc,
                       *, exp_dtype):
    # q_ref : [TQ, DK] bf16 (1/sqrt(d_k) already folded into the Q projection)
    # kt_ref: [DK, TK] bf16 (pre-transposed K -> plain A @ B on the MXU)
    # v_ref : [TK, DK] bf16,  mask_ref: [TQm, TK] int8 (TQm in {1, TQ})
    kv_idx = pl.program_id(3)

    @pl.when(kv_idx == 0)
    def _init():
        m_sc[...] = jnp.full_like(m_sc, -jnp.inf)
        l_sc[...] = jnp.zeros_like(l_sc)
        acc_sc[...] = jnp.zeros_like(acc_sc)

    s = jnp.dot(q_ref[...], kt_ref[...], preferred_element_type=jnp.float32)  # [TQ,TK] f32
    # TODO(synk): synthesize causal/band masks in-kernel with broadcasted_iota instead of DMA.
    s = jnp.where(mask_ref[...] != 0, s, _NEG_INF)   # broadcasts over queries when TQm == 1

    m_prev = m_sc[...]
    m_new = jnp.maximum(m_prev, jnp.max(s, axis=-1, keepdims=True))
    alpha = jnp.exp(m_prev - m_new)                              # f32 [TQ,1]
    p = jnp.exp((s - m_new).astype(exp_dtype))                   # bf16 on v6e/v7x, f32 on v5e
    l_sc[...] = alpha * l_sc[...] + jnp.sum(p.astype(jnp.float32), axis=-1, keepdims=True)
    acc_sc[...] = alpha * acc_sc[...] + jnp.dot(
        p.astype(v_ref.dtype), v_ref[...], preferred_element_type=jnp.float32)
    m_sc[...] = m_new

    @pl.when(kv_idx == pl.num_programs(3) - 1)
    def _finalize():
        inv_l = pl.reciprocal(l_sc[...], approx=True)            # EUP slot, ~free
        o_ref[...] = (acc_sc[...] * inv_l).astype(o_ref.dtype)


def flash_attention(q, kt, v, mask, *, block_q=256, block_k=512,
                    out_dtype=jnp.bfloat16, exp_dtype=_EXP_DTYPE):
    """q: [B,H,Sq,Dk], kt: [B,H,Dk,Sk], v: [B,H,Sk,Dk] bf16;
    mask: [B or 1, Sq or 1, Sk] int8 -> [B, H, Sq, Dk]."""
    B, H, Sq, Dk = q.shape
    Sk = kt.shape[3]
    Bm, Sqm, _ = mask.shape

    tq = _pick_tile(Sq, block_q, 32)
    tk = _pick_tile(Sk, block_k, 128)
    tq_m = tq if Sqm == Sq else 1

    grid = (B, H, Sq // tq, Sk // tk)

    q_spec = pl.BlockSpec((None, None, tq, Dk), lambda b, h, i, j: (b, h, i, 0))
    kt_spec = pl.BlockSpec((None, None, Dk, tk), lambda b, h, i, j: (b, h, 0, j))
    v_spec = pl.BlockSpec((None, None, tk, Dk), lambda b, h, i, j: (b, h, j, 0))
    mask_spec = pl.BlockSpec(
        (None, tq_m, tk),
        lambda b, h, i, j: (b if Bm == B else 0, i if Sqm == Sq else 0, j))
    # TODO(synk): lane-dense [B, Sq, H*Dk] out_spec when Dk < 128 (unmasked vst + removes
    # the post-attention transpose).
    out_spec = pl.BlockSpec((None, None, tq, Dk), lambda b, h, i, j: (b, h, i, 0))

    return pl.pallas_call(
        functools.partial(_flash_attn_kernel, exp_dtype=exp_dtype),
        out_shape=jax.ShapeDtypeStruct((B, H, Sq, Dk), out_dtype),
        grid=grid,
        in_specs=[q_spec, kt_spec, v_spec, mask_spec],
        out_specs=out_spec,
        scratch_shapes=[
            pltpu.VMEM((tq, 1), jnp.float32),    # running max
            pltpu.VMEM((tq, 1), jnp.float32),    # running sum
            pltpu.VMEM((tq, Dk), jnp.float32),   # running accumulator
        ],
        compiler_params=pltpu.CompilerParams(
            dimension_semantics=("parallel", "parallel", "parallel", "arbitrary"),
            vmem_limit_bytes=_VMEM_LIMIT,
        ),
    )(q, kt, v, mask)


# ---------------------------------------------------------------------------
# Module wrapper (glue in plain JAX, hot paths in Pallas)
# ---------------------------------------------------------------------------

def multi_head_attention(params, query, key, value, mask, *, heads, d_k,
                         out_dtype=jnp.float32):
    Sq, B, d_model = query.shape
    Sk = key.shape[0]
    scale = 1.0 / math.sqrt(d_k)

    # TODO(synk): fold the head-major layout change into the projection out_spec and
    # fuse wq/wk/wv into one [d_model, 3*H*Dk] projection when query is key is value.
    def project(x, w, b, *, proj_scale=1.0, transpose_k=False):
        S = x.shape[0]
        y = linear(x.reshape(S * B, d_model), w, b, scale=proj_scale,
                   out_dtype=jnp.bfloat16)
        y = y.reshape(S, B, heads, d_k)
        if transpose_k:
            return jnp.transpose(y, (1, 2, 3, 0))   # [B, H, Dk, S]  (pre-transposed K)
        return jnp.transpose(y, (1, 2, 0, 3))       # [B, H, S, Dk]

    q = project(query, params["wq"], params["bq"], proj_scale=scale)
    kt = project(key, params["wk"], params["bk"], transpose_k=True)
    v = project(value, params["wv"], params["bv"])

    if mask is not None:
        # [Sq_m, Sk, B_m] -> [B_m, Sq_m, Sk] int8; batch / query broadcast stays in the
        # attention kernel's index_map (no dense HBM broadcast).
        assert mask.shape[1] == Sk
        m = (jnp.transpose(mask, (2, 0, 1)) != 0).astype(jnp.int8)
    else:
        m = jnp.ones((1, 1, Sk), dtype=jnp.int8)

    ctx = flash_attention(q, kt, v, m)                     # [B, H, Sq, Dk] bf16

    # [B, H, Sq, Dk] -> [Sq*B, H*Dk], then the final output projection.
    x = jnp.transpose(ctx, (2, 0, 1, 3)).reshape(Sq * B, heads * d_k)
    out = linear(x, params["wo"], params["bo"], out_dtype=out_dtype)
    return out.reshape(Sq, B, d_model)


def init_params(key, d_model, heads, d_k):
    # Weights stored pre-transposed as [d_in, d_out] and in bf16 (cast once at init,
    # not per call); biases kept in f32 (added in f32 inside the kernels).
    ks = jax.random.split(key, 8)

    def w(k, shape):
        return (jax.random.normal(k, shape, dtype=jnp.float32) * 0.02).astype(jnp.bfloat16)

    def bvec(k, shape):
        return jax.random.normal(k, shape, dtype=jnp.float32) * 0.02

    return {
        "wq": w(ks[0], (d_model, heads * d_k)), "bq": bvec(ks[1], (heads * d_k,)),
        "wk": w(ks[2], (d_model, heads * d_k)), "bk": bvec(ks[3], (heads * d_k,)),
        "wv": w(ks[4], (d_model, heads * d_k)), "bv": bvec(ks[5], (heads * d_k,)),
        "wo": w(ks[6], (d_model, d_model)),     "bo": bvec(ks[7], (d_model,)),
    }


def _reference(params, query, key, value, mask, *, heads, d_k):
    """Pure-jnp f32 reference mirroring the PyTorch forward (eval-mode dropout)."""
    Sq, B, d_model = query.shape
    Sk = key.shape[0]
    scale = 1.0 / math.sqrt(d_k)

    def lin(x, w, b):
        return x @ w.astype(jnp.float32) + b       # weights stored as [d_in, d_out]

    q = lin(query, params["wq"], params["bq"]).reshape(Sq, B, heads, d_k)
    k = lin(key, params["wk"], params["bk"]).reshape(Sk, B, heads, d_k)
    v = lin(value, params["wv"], params["bv"]).reshape(Sk, B, heads, d_k)
    s = jnp.einsum("ibhd,jbhd->ijbh", q, k) * scale
    if mask is not None:
        m = jnp.broadcast_to(mask, (Sq, Sk, B))[..., None]
        s = jnp.where(m == 0, -jnp.inf, s)
    a = jax.nn.softmax(s, axis=1)
    x = jnp.einsum("ijbh,jbhd->ibhd", a, v).reshape(Sq, B, heads * d_k)
    return lin(x, params["wo"], params["bo"])


def _run_case(seq_len, batch, d_model, heads, seed=0, atol=2e-2, rtol=2e-2):
    d_k = d_model // heads
    root = jax.random.PRNGKey(seed)
    kp, kq, kk, kv = jax.random.split(root, 4)
    params = init_params(kp, d_model, heads, d_k)

    query = jax.random.normal(kq, (seq_len, batch, d_model), dtype=jnp.float32)
    key = jax.random.normal(kk, (seq_len, batch, d_model), dtype=jnp.float32)
    value = jax.random.normal(kv, (seq_len, batch, d_model), dtype=jnp.float32)
    # causal mask, shape [seq_len_q, seq_len_k, 1] (broadcast over batch)
    mask = jnp.tril(jnp.ones((seq_len, seq_len), dtype=jnp.float32))[:, :, None]

    out = multi_head_attention(params, query, key, value, mask, heads=heads, d_k=d_k)
    out = jax.block_until_ready(out)

    ref = _reference(params, query, key, value, mask, heads=heads, d_k=d_k)
    assert out.shape == (seq_len, batch, d_model)
    # bf16 MXU operands + (possibly) bf16 exp + approx reciprocal -> bf16-level tolerance
    assert jnp.allclose(out, ref, atol=atol, rtol=rtol), (
        f"mismatch vs jnp reference (seq={seq_len}, batch={batch}, d_model={d_model}); "
        f"max abs diff = {float(jnp.max(jnp.abs(out - ref)))}")


if __name__ == "__main__":
    # Small smoke test (full-extent blocks), matches the module's intended tiny shapes.
    _run_case(seq_len=8, batch=2, d_model=32, heads=4)
    # Tiled case: exercises q-tiling, multi-KV-tile online softmax, mask broadcast and
    # row/column tiling of the projections at a realistic head size (d_k = 64).
    _run_case(seq_len=1024, batch=1, d_model=256, heads=4)
    print("KERNEL_OK")
</pallas_src>

<mosaic_0001>
module attributes {stable_mosaic.version = 11 : i64} {
  func.func @_linear_kernel(%arg0: i32, %arg1: i32, %arg2: memref<16x32xf32, #tpu.memory_space<vmem>>, %arg3: memref<32x32xbf16, #tpu.memory_space<vmem>>, %arg4: memref<1x32xf32, #tpu.memory_space<vmem>>, %arg5: memref<16x32xbf16, #tpu.memory_space<vmem>>) attributes {dimension_semantics = [#tpu.dimension_semantics<parallel>, #tpu.dimension_semantics<parallel>], iteration_bounds = array<i64: 1, 1>, scalar_prefetch = 0 : i64, scratch_operands = 0 : i64, tpu.core_type = #tpu.core_type<tc>, window_params = [{transform_indices = @transform_0, window_bounds = array<i64: 16, 32>}, {transform_indices = @transform_1, window_bounds = array<i64: 32, 32>}, {transform_indices = @transform_2, window_bounds = array<i64: 1, 32>}, {transform_indices = @transform_3, window_bounds = array<i64: 16, 32>}]} {
    %c0 = arith.constant 0 : index
    %c0_0 = arith.constant 0 : index
    %0 = vector.load %arg2[%c0, %c0_0] : memref<16x32xf32, #tpu.memory_space<vmem>>, vector<16x32xf32>
    %1 = arith.truncf %0 : vector<16x32xf32> to vector<16x32xbf16>
    %c0_1 = arith.constant 0 : index
    %c0_2 = arith.constant 0 : index
    %2 = vector.load %arg3[%c0_1, %c0_2] : memref<32x32xbf16, #tpu.memory_space<vmem>>, vector<32x32xbf16>
    %cst = arith.constant dense<0.000000e+00> : vector<16x32xf32>
    %3 = tpu.matmul %1, %2, %cst {dimension_numbers = #tpu.dot_dimension_numbers<[1], [0], [0], [1], [0, 0, 1, 1], [], []>} : vector<16x32xbf16>, vector<32x32xbf16>, vector<16x32xf32> -> vector<16x32xf32>
    %c0_3 = arith.constant 0 : index
    %c0_4 = arith.constant 0 : index
    %4 = vector.load %arg4[%c0_3, %c0_4] : memref<1x32xf32, #tpu.memory_space<vmem>>, vector<1x32xf32>
    %5 = vector.broadcast %4 : vector<1x32xf32> to vector<16x32xf32>
    %6 = arith.addf %3, %5 : vector<16x32xf32>
    %cst_5 = arith.constant 0.353553385 : f32
    %7 = vector.broadcast %cst_5 : f32 to vector<16x32xf32>
    %8 = arith.mulf %6, %7 : vector<16x32xf32>
    %9 = arith.truncf %8 : vector<16x32xf32> to vector<16x32xbf16>
    %c0_6 = arith.constant 0 : index
    %c0_7 = arith.constant 0 : index
    %10 = vector.load %arg5[%c0_6, %c0_7] : memref<16x32xbf16, #tpu.memory_space<vmem>>, vector<16x32xbf16>
    tpu.vector_store %arg5[%c0_6, %c0_7], %9 {strides = array<i32>} : memref<16x32xbf16, #tpu.memory_space<vmem>>, vector<16x32xbf16>,
    return
  }
  func.func @transform_0(%arg0: i32, %arg1: i32) -> (i32, i32) {
    %c0_i32 = arith.constant 0 : i32
    %c0_i32_0 = arith.constant 0 : i32
    return %arg0, %c0_i32 : i32, i32
  }
  func.func @transform_1(%arg0: i32, %arg1: i32) -> (i32, i32) {
    %c0_i32 = arith.constant 0 : i32
    %c0_i32_0 = arith.constant 0 : i32
    return %c0_i32, %arg1 : i32, i32
  }
  func.func @transform_2(%arg0: i32, %arg1: i32) -> (i32, i32) {
    %c0_i32 = arith.constant 0 : i32
    %c0_i32_0 = arith.constant 0 : i32
    return %c0_i32, %arg1 : i32, i32
  }
  func.func @transform_3(%arg0: i32, %arg1: i32) -> (i32, i32) {
    %c0_i32 = arith.constant 0 : i32
    return %arg0, %arg1 : i32, i32
  }
}

</mosaic_0001>

<bundles_post_ra>
// kernel: tpu_custom_call.1
= control target key start
LH: loop header
LB: loop body
LE: loop exit
PB: predicated region body
PF: predicated region fallthrough
CT: control target
= control target key end

     0   :  { %8 = vsyncpa [#allocation3], 0  ;;  %s258_s0 = inlined_call_operand.hbm [shape: f32[16,32], index: 0, kind: input, shape index: {}]   ;;  %s259_s1 = inlined_call_operand.hbm [shape: bf16[32,32], index: 1, kind: input, shape index: {}]   ;;  %s260_s2 = inlined_call_operand.vmem [shape: f32[1,32], index: 2, kind: input, shape index: {}]   ;;  %s261_s3 = inlined_call_operand.hbm [shape: bf16[16,32], index: 3, kind: output, shape index: {}]  }
   0x1   :  { %9 = vsyncpa [#allocation6], 0 }
   0x2   :  { %10 = vsyncpa [#allocation4], 0  ;;  %s15_s14 = sshll.u32 %s258_s0, 4  ;;  %s213_s15 = smov [#allocation2]   ;;  %s16_s14 = int_to_ptr.hbm [resolvable:$true] %s15_s14 }
   0x3   :  { %s17_s16 = sshll.u32 %s213_s15, 4  ;;  %s28_s19 = sshll.u32 %s259_s1, 4  ;;  %s18_s16 = int_to_ptr.vmem [resolvable:$true] %s17_s16  ;;  %s29_s19 = int_to_ptr.hbm [resolvable:$true] %s28_s19 }
   0x4   :  { %s214_s20 = smov 128   ;;  %s215_s21 = smov 8  }
   0x5   :  { %23 = dma.hbm_to_vmem [thread:$0]  %s16_s14, 256, %s18_s16, [#allocation3], %s214_s20, %s214_s20, %s215_s21  }
   0x6   :  { %s216_s22 = smov [#allocation5]   ;;  %s217_s24 = smov 64  }
   0x7   :  { %s30_s23 = sshll.u32 %s216_s22, 4  ;;  %s218_s25 = smov 4   ;;  %s31_s23 = int_to_ptr.vmem [resolvable:$true] %s30_s23 }
   0x8   :  { %36 = dma.hbm_to_vmem [thread:$0]  %s29_s19, 256, %s31_s23, [#allocation6], %s217_s24, %s217_s24, %s218_s25  }
   0x9   :  { %207 = dma.done.wait [#allocation3], 256  }
   0xa   :  { %208 = vsyncadd [#allocation3], 4294967040 }
   0xb   :  { %209 = dma.done.wait [#allocation6], 256  }
   0xc   :  { %210 = vsyncadd [#allocation6], 4294967040  ;;  %v126_v0 = vld [vmem:[#allocation5 + $0x8] sm:$0xff]  ;;  %v125_v1 = vld [vmem:[#allocation5] sm:$0xff]  ;;  %vm71_vm0 = vcmask 261120   ;;  %vm93_vm1 = vcmask 257024  }
   0xd   :  { %81 = vmatpush.bf16.msra.mxu0 %v126_v0  ;;  %v48_v2 = vld [vmem:[#allocation2] sm:$0xff]  ;;  %v49_v3 = vld [vmem:[#allocation2 + $0x8] sm:$0xff]  ;;  %s219_s26 = smov [#allocation7]   ;;  %s102_s30 = sshll.u32 %s261_s3, 4  ;;  %s103_s30 = int_to_ptr.hbm [resolvable:$true] %s102_s30 }
   0xe   :  { %v50_v4 = vpack.c.bf16 %v49_v3, %v48_v2  ;;  %v134_v5 = vld [vmem:[%s260_s2] ss:$0 sm:$0xff]  ;;  %s100_s27 = sshll.u32 %s219_s26, 4  ;;  %s101_s27 = int_to_ptr.vmem [resolvable:$true] %s100_s27 }
  0x11   :  { %82 = vmatpush.bf16.msra.mxu0 %v125_v1 }
  0x14   :  { %124 = vmatmul.msk.bf16.vlgmr.msra.gmra.mxu0 %vm71_vm0, %v50_v4 }
  0x91   :  { %v84_v6 = vpop.f32.mrf.mxu0 }
  0x92   :  { %v85_v7 = vadd.f32 %v134_v5, %v84_v6 }
  0x94   :  { %v89_v8 = vmul.f32 0.35355338, %v85_v7 }
  0x96   :  { %v91_v9 = vpack.c.bf16 %v89_v8, %v89_v8 }
  0x98   :  { %94 = vst.msk [vmem:[#allocation7] sm:$0xf] %vm93_vm1, %v91_v9 }
  0x99   :  { %v86_v10 = vpop.f32.mrf.mxu0 }
  0x9a   :  { %v87_v11 = vadd.f32 %v134_v5, %v86_v10 }
  0x9c   :  { %v90_v12 = vmul.f32 0.35355338, %v87_v11 }
  0x9e   :  { %v92_v13 = vpack.c.bf16 %v90_v12, %v90_v12 }
  0xa0   :  { %95 = vst.msk [vmem:[#allocation7 + $0x4] sm:$0xf] %vm93_vm1, %v92_v13 }
  0xa1   :  { %108 = dma.vmem_to_hbm [thread:$0]  %s101_s27, 128, %s103_s30, [#allocation4], %s217_s24, %s217_s24, %s218_s25  }
  0xa2   :  { %211 = dma.done.wait [#allocation4], 128  }
  0xa3   :  { %212 = vsyncadd [#allocation4], 4294967168 }
  0xa4   :  { %113 = vsyncpa [#allocation3], 1 }
  0xa5   :  { %114 = vsyncpa [#allocation6], 1 }
  0xa6   :  { %115 = vsyncpa [#allocation4], 1 }

</bundles_post_ra>
